<compile_context>
chip_gen: v7x
topology: tpu7x:2x2x1
jax: 0.10.0
libtpu: 0.0.40
codegen_flags: <defaults>
</compile_context>

<pallas_src>
import jax
import jax.numpy as jnp
from jax.experimental import pallas as pl
from jax.experimental.pallas import tpu as pltpu

EPS = 1e-5


def _bn_train(h, gamma, beta):
    """Training-mode BatchNorm (biased var, like PyTorch fwd) on (C, N*H*W).

    Two-pass mean/var kept on purpose (avoids E[x^2]-E[x]^2 cancellation);
    the tile is VMEM/register resident anyway.
    """
    mu = jnp.mean(h, axis=1, keepdims=True)
    var = jnp.mean(jnp.square(h - mu), axis=1, keepdims=True)
    return (h - mu) * jax.lax.rsqrt(var + EPS) * gamma + beta


def make_bottleneck_kernel(N, H, W, Cin, Cp, Cout, matmul_dtype):
    HW = H * W
    NHW = N * HW

    def kernel(x_ref, w1_ref, g1_ref, b1_ref, w2f_ref, g2_ref, b2_ref,
               w3_ref, g3_ref, b3_ref, mask_ref, o_ref):
        # ---- in-kernel channel-major relayout (lane-aligned concat only) ----
        x_parts = [x_ref[n] for n in range(N)]             # N x (Cin, HW), f32
        x_cm = jnp.concatenate(x_parts, axis=1)            # (Cin, NHW)

        # ---- conv1: 1x1 conv == channel matmul -------------------------------
        h1 = jnp.dot(w1_ref[...], x_cm.astype(matmul_dtype),
                     preferred_element_type=jnp.float32)   # (Cp, NHW) f32
        h1 = jnp.maximum(_bn_train(h1, g1_ref[...], b1_ref[...]), 0.0)

        # ---- conv2: 3x3 conv, padding=1 -> ONE fused K=9*Cp matmul -----------
        masks = mask_ref[...]                               # (9, NHW), 0/1 f32
        taps = []
        for dy in (-1, 0, 1):                               # 2 row rolls
            row = h1 if dy == 0 else pltpu.roll(h1, shift=(-dy * W) % NHW, axis=1)
            for dx in (-1, 0, 1):                           # +2 column rolls each
                tap = row if dx == 0 else pltpu.roll(row, shift=(-dx) % NHW, axis=1)
                t = 3 * (dy + 1) + (dx + 1)
                taps.append(tap * masks[t:t + 1, :])        # zero the padding halo
        # Cp is a multiple of 8 -> sublane-aligned concat, no repacking.
        tapcat = jnp.concatenate(taps, axis=0)              # (9*Cp, NHW)
        h2 = jnp.dot(w2f_ref[...], tapcat.astype(matmul_dtype),
                     preferred_element_type=jnp.float32)    # (Cp, NHW)
        h2 = jnp.maximum(_bn_train(h2, g2_ref[...], b2_ref[...]), 0.0)

        # ---- conv3: 1x1 conv (expansion) --------------------------------------
        h3 = jnp.dot(w3_ref[...], h2.astype(matmul_dtype),
                     preferred_element_type=jnp.float32)    # (Cout, NHW)
        h3 = _bn_train(h3, g3_ref[...], b3_ref[...])

        # ---- residual add + relu; store in the input's (N, C, HW) layout ------
        for n in range(N):
            o_ref[n] = jnp.maximum(h3[:, n * HW:(n + 1) * HW] + x_parts[n], 0.0)

    return kernel


def bottleneck_pallas(x_nchw, params, *, matmul_dtype=jnp.float32):
    w1, w2, w3, g1, b1, g2, b2, g3, b3 = params
    N, Cin, H, W = x_nchw.shape
    Cmid = w1.shape[0]
    Cout = w3.shape[0]
    HW, NHW = H * W, N * H * W
    assert Cout == Cin, "identity shortcut needs in_channels == out_channels*4"

    # Pad bottleneck width to a multiple of 8 sublanes; padded channels have
    # zero weights/gamma/beta so they stay exactly zero end-to-end.
    Cp = -(-Cmid // 8) * 8
    pc = Cp - Cmid
    w1p = jnp.pad(w1, ((0, pc), (0, 0))).astype(matmul_dtype)            # (Cp, Cin)
    w2p = jnp.pad(w2, ((0, pc), (0, pc), (0, 0), (0, 0)))                # (Cp, Cp, 3, 3)
    # Fused 3x3 weight: w2f[o, t*Cp + i] = w2[o, i, ky, kx], t = 3*ky + kx.
    w2f = jnp.transpose(
        jnp.transpose(w2p, (2, 3, 1, 0)).reshape(9 * Cp, Cp)).astype(matmul_dtype)
    w3p = jnp.pad(w3, ((0, 0), (0, pc))).astype(matmul_dtype)            # (Cout, Cp)
    g1p = jnp.pad(g1, (0, pc)).reshape(Cp, 1)
    b1p = jnp.pad(b1, (0, pc)).reshape(Cp, 1)
    g2p = jnp.pad(g2, (0, pc)).reshape(Cp, 1)
    b2p = jnp.pad(b2, (0, pc)).reshape(Cp, 1)
    g3r = g3.reshape(Cout, 1)
    b3r = b3.reshape(Cout, 1)

    # Compact host-precomputed zero-padding masks, one row per tap: (9, NHW).
    p = jnp.arange(NHW)
    hh = (p % HW) // W
    ww = p % W
    rows = []
    for dy in (-1, 0, 1):
        for dx in (-1, 0, 1):
            rows.append((hh + dy >= 0) & (hh + dy < H) &
                        (ww + dx >= 0) & (ww + dx < W))
    mask = jnp.stack(rows).astype(jnp.float32)                            # (9, NHW)

    # Only FREE reshapes around the kernel (no wrapper transposes).
    x3 = x_nchw.reshape(N, Cin, HW)

    flops = 2 * NHW * (Cp * Cin + Cp * 9 * Cp + Cout * Cp) + 12 * NHW * (2 * Cp + 2 * Cout)
    bytes_accessed = 4 * (2 * N * Cin * HW + 9 * NHW) + sum(
        int(a.size) * a.dtype.itemsize
        for a in (w1p, w2f, w3p, g1p, b1p, g2p, b2p, g3r, b3r))

    kernel = make_bottleneck_kernel(N, H, W, Cin, Cp, Cout, matmul_dtype)
    vmem = pl.BlockSpec(memory_space=pltpu.MemorySpace.VMEM)
    out = pl.pallas_call(
        kernel,
        out_shape=jax.ShapeDtypeStruct((N, Cout, HW), jnp.float32),
        in_specs=[vmem] * 11,
        out_specs=vmem,
        input_output_aliases={0: 0},          # output reuses the input's HBM buffer
        compiler_params=pltpu.CompilerParams(vmem_limit_bytes=16 * 1024 * 1024),
        cost_estimate=pl.CostEstimate(flops=int(flops),
                                      transcendentals=2 * Cp + Cout,
                                      bytes_accessed=int(bytes_accessed)),
    )(x3, w1p, g1p, b1p, w2f, g2p, b2p, w3p, g3r, b3r, mask)

    return out.reshape(N, Cout, H, W)


# ----------------------------- pure-JAX reference -----------------------------
def bottleneck_ref(x_nchw, params, *, matmul_dtype=jnp.float32):
    w1, w2, w3, g1, b1, g2, b2, g3, b3 = params
    x = jnp.transpose(x_nchw, (0, 2, 3, 1))                              # NHWC
    Cin = x.shape[-1]
    Cmid = w1.shape[0]
    Cout = w3.shape[0]

    def conv(h, w_hwio, pad):
        # Rounds conv operands at the same boundary as the kernel; accumulates f32.
        return jax.lax.conv_general_dilated(
            h.astype(matmul_dtype), w_hwio.astype(matmul_dtype),
            window_strides=(1, 1), padding=pad,
            dimension_numbers=('NHWC', 'HWIO', 'NHWC'),
            preferred_element_type=jnp.float32,
            precision=jax.lax.Precision.HIGHEST)

    def bn(h, g, b):
        mu = jnp.mean(h, axis=(0, 1, 2), keepdims=True)
        var = jnp.mean(jnp.square(h - mu), axis=(0, 1, 2), keepdims=True)
        return ((h - mu) * jax.lax.rsqrt(var + EPS) * g.reshape(1, 1, 1, -1)
                + b.reshape(1, 1, 1, -1))

    h = conv(x, jnp.transpose(w1).reshape(1, 1, Cin, Cmid), 'VALID')
    h = jax.nn.relu(bn(h, g1, b1))
    h = conv(h, jnp.transpose(w2, (2, 3, 1, 0)), 'SAME')
    h = jax.nn.relu(bn(h, g2, b2))
    h = conv(h, jnp.transpose(w3).reshape(1, 1, Cmid, Cout), 'VALID')
    h = bn(h, g3, b3)
    out = jax.nn.relu(h + x)
    return jnp.transpose(out, (0, 3, 1, 2))


# ------------------------------------ main -------------------------------------
if __name__ == "__main__":
    # Module config: Bottleneck(in_channels=16, out_channels=4); expansion=4,
    # so out channels == 16 == in channels and the identity shortcut is valid.
    N, Cin, H, W = 2, 16, 16, 16
    Cmid = 4                      # out_channels
    Cout = Cmid * 4               # out_channels * expansion == Cin

    key = jax.random.PRNGKey(0)
    k = jax.random.split(key, 10)

    # Synthetic parameters in PyTorch layouts:
    #   w1: (Cmid, Cin)          conv1 1x1 (out, in)
    #   w2: (Cmid, Cmid, 3, 3)   conv2 3x3 (out, in, kh, kw)
    #   w3: (Cout, Cmid)         conv3 1x1 (out, in)
    #   gamma/beta: (C,)
    w1 = 0.3 * jax.random.normal(k[0], (Cmid, Cin), jnp.float32)
    w2 = 0.2 * jax.random.normal(k[1], (Cmid, Cmid, 3, 3), jnp.float32)
    w3 = 0.3 * jax.random.normal(k[2], (Cout, Cmid), jnp.float32)
    g1 = 1.0 + 0.1 * jax.random.normal(k[3], (Cmid,), jnp.float32)
    b1 = 0.1 * jax.random.normal(k[4], (Cmid,), jnp.float32)
    g2 = 1.0 + 0.1 * jax.random.normal(k[5], (Cmid,), jnp.float32)
    b2 = 0.1 * jax.random.normal(k[6], (Cmid,), jnp.float32)
    g3 = 1.0 + 0.1 * jax.random.normal(k[7], (Cout,), jnp.float32)
    b3 = 0.1 * jax.random.normal(k[8], (Cout,), jnp.float32)
    params = (w1, w2, w3, g1, b1, g2, b2, g3, b3)

    x = jax.random.normal(k[9], (N, Cin, H, W), jnp.float32)

    # f32 matmuls (v5e-friendly, tight check) and bf16 matmuls (v6e/v7x MXU
    # path); the reference rounds its conv operands at the same boundaries, so
    # both comparisons stay tight.
    for mm_dtype, tol in ((jnp.float32, 3e-2), (jnp.bfloat16, 5e-2)):
        out = jax.block_until_ready(bottleneck_pallas(x, params, matmul_dtype=mm_dtype))
        ref = jax.block_until_ready(bottleneck_ref(x, params, matmul_dtype=mm_dtype))
        assert out.shape == x.shape
        max_err = float(jnp.max(jnp.abs(out - ref)))
        assert max_err < tol, f"mismatch ({mm_dtype.__name__}): max_err={max_err}"

    print("KERNEL_OK")
</pallas_src>

<mosaic_0001>
module attributes {stable_mosaic.version = 11 : i64} {
  func.func @kernel(%arg0: memref<2x16x256xf32, #tpu.memory_space<vmem>>, %arg1: memref<8x16xf32, #tpu.memory_space<vmem>>, %arg2: memref<8x1xf32, #tpu.memory_space<vmem>>, %arg3: memref<8x1xf32, #tpu.memory_space<vmem>>, %arg4: memref<8x72xf32, #tpu.memory_space<vmem>>, %arg5: memref<8x1xf32, #tpu.memory_space<vmem>>, %arg6: memref<8x1xf32, #tpu.memory_space<vmem>>, %arg7: memref<16x8xf32, #tpu.memory_space<vmem>>, %arg8: memref<16x1xf32, #tpu.memory_space<vmem>>, %arg9: memref<16x1xf32, #tpu.memory_space<vmem>>, %arg10: memref<9x512xf32, #tpu.memory_space<vmem>>, %arg11: memref<2x16x256xf32, #tpu.memory_space<vmem>>) attributes {dimension_semantics = [], scalar_prefetch = 0 : i64, scratch_operands = 0 : i64, tpu.core_type = #tpu.core_type<tc>} {
    %c0 = arith.constant 0 : index
    %c0_0 = arith.constant 0 : index
    %c0_1 = arith.constant 0 : index
    %0 = vector.load %arg0[%c0, %c0_0, %c0_1] : memref<2x16x256xf32, #tpu.memory_space<vmem>>, vector<1x16x256xf32>
    %1 = vector.shape_cast %0 : vector<1x16x256xf32> to vector<16x256xf32>
    %c1 = arith.constant 1 : index
    %c0_2 = arith.constant 0 : index
    %c0_3 = arith.constant 0 : index
    %2 = vector.load %arg0[%c1, %c0_2, %c0_3] : memref<2x16x256xf32, #tpu.memory_space<vmem>>, vector<1x16x256xf32>
    %3 = vector.shape_cast %2 : vector<1x16x256xf32> to vector<16x256xf32>
    %4 = tpu.concatenate %1, %3 in 1 : vector<16x256xf32>, vector<16x256xf32> -> vector<16x512xf32>
    %c0_4 = arith.constant 0 : index
    %c0_5 = arith.constant 0 : index
    %5 = vector.load %arg1[%c0_4, %c0_5] : memref<8x16xf32, #tpu.memory_space<vmem>>, vector<8x16xf32>
    %cst = arith.constant dense<0.000000e+00> : vector<8x512xf32>
    %6 = tpu.matmul %5, %4, %cst {dimension_numbers = #tpu.dot_dimension_numbers<[1], [0], [0], [1], [0, 0, 1, 1], [], []>} : vector<8x16xf32>, vector<16x512xf32>, vector<8x512xf32> -> vector<8x512xf32>
    %c0_6 = arith.constant 0 : index
    %c0_7 = arith.constant 0 : index
    %7 = vector.load %arg2[%c0_6, %c0_7] : memref<8x1xf32, #tpu.memory_space<vmem>>, vector<8x1xf32>
    %c0_8 = arith.constant 0 : index
    %c0_9 = arith.constant 0 : index
    %8 = vector.load %arg3[%c0_8, %c0_9] : memref<8x1xf32, #tpu.memory_space<vmem>>, vector<8x1xf32>
    %cst_10 = arith.constant dense<0.000000e+00> : vector<8xf32>
    %9 = vector.multi_reduction <add>, %6, %cst_10 [1] : vector<8x512xf32> to vector<8xf32>
    %10 = vector.shape_cast %9 : vector<8xf32> to vector<8x1xf32>
    %cst_11 = arith.constant 5.120000e+02 : f32
    %11 = vector.broadcast %cst_11 : f32 to vector<8x1xf32>
    %12 = arith.divf %10, %11 : vector<8x1xf32>
    %13 = vector.broadcast %12 : vector<8x1xf32> to vector<8x512xf32>
    %14 = arith.subf %6, %13 : vector<8x512xf32>
    %15 = arith.mulf %14, %14 : vector<8x512xf32>
    %cst_12 = arith.constant dense<0.000000e+00> : vector<8xf32>
    %16 = vector.multi_reduction <add>, %15, %cst_12 [1] : vector<8x512xf32> to vector<8xf32>
    %17 = vector.shape_cast %16 : vector<8xf32> to vector<8x1xf32>
    %cst_13 = arith.constant 5.120000e+02 : f32
    %18 = vector.broadcast %cst_13 : f32 to vector<8x1xf32>
    %19 = arith.divf %17, %18 : vector<8x1xf32>
    %20 = vector.broadcast %12 : vector<8x1xf32> to vector<8x512xf32>
    %21 = arith.subf %6, %20 : vector<8x512xf32>
    %cst_14 = arith.constant 9.99999974E-6 : f32
    %22 = vector.broadcast %cst_14 : f32 to vector<8x1xf32>
    %23 = arith.addf %19, %22 : vector<8x1xf32>
    %24 = math.rsqrt %23 : vector<8x1xf32>
    %25 = vector.broadcast %24 : vector<8x1xf32> to vector<8x512xf32>
    %26 = arith.mulf %21, %25 : vector<8x512xf32>
    %27 = vector.broadcast %7 : vector<8x1xf32> to vector<8x512xf32>
    %28 = arith.mulf %26, %27 : vector<8x512xf32>
    %29 = vector.broadcast %8 : vector<8x1xf32> to vector<8x512xf32>
    %30 = arith.addf %28, %29 : vector<8x512xf32>
    %cst_15 = arith.constant 0.000000e+00 : f32
    %31 = vector.broadcast %cst_15 : f32 to vector<8x512xf32>
    %32 = arith.maximumf %30, %31 : vector<8x512xf32>
    %c0_16 = arith.constant 0 : index
    %c0_17 = arith.constant 0 : index
    %33 = vector.load %arg10[%c0_16, %c0_17] : memref<9x512xf32, #tpu.memory_space<vmem>>, vector<9x512xf32>
    %c16_i32 = arith.constant 16 : i32
    %34 = tpu.dynamic_rotate %32 by %c16_i32 dim 1 : vector<8x512xf32>, i32 -> vector<8x512xf32>
    %c1_i32 = arith.constant 1 : i32
    %35 = tpu.dynamic_rotate %34 by %c1_i32 dim 1 : vector<8x512xf32>, i32 -> vector<8x512xf32>
    %36 = vector.extract_strided_slice %33 {offsets = [0, 0], sizes = [1, 512], strides = [1, 1]} : vector<9x512xf32> to vector<1x512xf32>
    %37 = vector.broadcast %36 : vector<1x512xf32> to vector<8x512xf32>
    %38 = arith.mulf %35, %37 : vector<8x512xf32>
    %39 = vector.extract_strided_slice %33 {offsets = [1, 0], sizes = [1, 512], strides = [1, 1]} : vector<9x512xf32> to vector<1x512xf32>
    %40 = vector.broadcast %39 : vector<1x512xf32> to vector<8x512xf32>
    %41 = arith.mulf %34, %40 : vector<8x512xf32>
    %c511_i32 = arith.constant 511 : i32
    %42 = tpu.dynamic_rotate %34 by %c511_i32 dim 1 : vector<8x512xf32>, i32 -> vector<8x512xf32>
    %43 = vector.extract_strided_slice %33 {offsets = [2, 0], sizes = [1, 512], strides = [1, 1]} : vector<9x512xf32> to vector<1x512xf32>
    %44 = vector.broadcast %43 : vector<1x512xf32> to vector<8x512xf32>
    %45 = arith.mulf %42, %44 : vector<8x512xf32>
    %c1_i32_18 = arith.constant 1 : i32
    %46 = tpu.dynamic_rotate %32 by %c1_i32_18 dim 1 : vector<8x512xf32>, i32 -> vector<8x512xf32>
    %47 = vector.extract_strided_slice %33 {offsets = [3, 0], sizes = [1, 512], strides = [1, 1]} : vector<9x512xf32> to vector<1x512xf32>
    %48 = vector.broadcast %47 : vector<1x512xf32> to vector<8x512xf32>
    %49 = arith.mulf %46, %48 : vector<8x512xf32>
    %50 = vector.extract_strided_slice %33 {offsets = [4, 0], sizes = [1, 512], strides = [1, 1]} : vector<9x512xf32> to vector<1x512xf32>
    %51 = vector.broadcast %50 : vector<1x512xf32> to vector<8x512xf32>
    %52 = arith.mulf %32, %51 : vector<8x512xf32>
    %c511_i32_19 = arith.constant 511 : i32
    %53 = tpu.dynamic_rotate %32 by %c511_i32_19 dim 1 : vector<8x512xf32>, i32 -> vector<8x512xf32>
    %54 = vector.extract_strided_slice %33 {offsets = [5, 0], sizes = [1, 512], strides = [1, 1]} : vector<9x512xf32> to vector<1x512xf32>
    %55 = vector.broadcast %54 : vector<1x512xf32> to vector<8x512xf32>
    %56 = arith.mulf %53, %55 : vector<8x512xf32>
    %c496_i32 = arith.constant 496 : i32
    %57 = tpu.dynamic_rotate %32 by %c496_i32 dim 1 : vector<8x512xf32>, i32 -> vector<8x512xf32>
    %c1_i32_20 = arith.constant 1 : i32
    %58 = tpu.dynamic_rotate %57 by %c1_i32_20 dim 1 : vector<8x512xf32>, i32 -> vector<8x512xf32>
    %59 = vector.extract_strided_slice %33 {offsets = [6, 0], sizes = [1, 512], strides = [1, 1]} : vector<9x512xf32> to vector<1x512xf32>
    %60 = vector.broadcast %59 : vector<1x512xf32> to vector<8x512xf32>
    %61 = arith.mulf %58, %60 : vector<8x512xf32>
    %62 = vector.extract_strided_slice %33 {offsets = [7, 0], sizes = [1, 512], strides = [1, 1]} : vector<9x512xf32> to vector<1x512xf32>
    %63 = vector.broadcast %62 : vector<1x512xf32> to vector<8x512xf32>
    %64 = arith.mulf %57, %63 : vector<8x512xf32>
    %c511_i32_21 = arith.constant 511 : i32
    %65 = tpu.dynamic_rotate %57 by %c511_i32_21 dim 1 : vector<8x512xf32>, i32 -> vector<8x512xf32>
    %66 = vector.extract_strided_slice %33 {offsets = [8, 0], sizes = [1, 512], strides = [1, 1]} : vector<9x512xf32> to vector<1x512xf32>
    %67 = vector.broadcast %66 : vector<1x512xf32> to vector<8x512xf32>
    %68 = arith.mulf %65, %67 : vector<8x512xf32>
    %69 = tpu.concatenate %38, %41, %45, %49, %52, %56, %61, %64, %68 in 0 : vector<8x512xf32>, vector<8x512xf32>, vector<8x512xf32>, vector<8x512xf32>, vector<8x512xf32>, vector<8x512xf32>, vector<8x512xf32>, vector<8x512xf32>, vector<8x512xf32> -> vector<72x512xf32>
    %c0_22 = arith.constant 0 : index
    %c0_23 = arith.constant 0 : index
    %70 = vector.load %arg4[%c0_22, %c0_23] : memref<8x72xf32, #tpu.memory_space<vmem>>, vector<8x72xf32>
    %cst_24 = arith.constant dense<0.000000e+00> : vector<8x512xf32>
    %71 = tpu.matmul %70, %69, %cst_24 {dimension_numbers = #tpu.dot_dimension_numbers<[1], [0], [0], [1], [0, 0, 1, 1], [], []>} : vector<8x72xf32>, vector<72x512xf32>, vector<8x512xf32> -> vector<8x512xf32>
    %c0_25 = arith.constant 0 : index
    %c0_26 = arith.constant 0 : index
    %72 = vector.load %arg5[%c0_25, %c0_26] : memref<8x1xf32, #tpu.memory_space<vmem>>, vector<8x1xf32>
    %c0_27 = arith.constant 0 : index
    %c0_28 = arith.constant 0 : index
    %73 = vector.load %arg6[%c0_27, %c0_28] : memref<8x1xf32, #tpu.memory_space<vmem>>, vector<8x1xf32>
    %cst_29 = arith.constant dense<0.000000e+00> : vector<8xf32>
    %74 = vector.multi_reduction <add>, %71, %cst_29 [1] : vector<8x512xf32> to vector<8xf32>
    %75 = vector.shape_cast %74 : vector<8xf32> to vector<8x1xf32>
    %cst_30 = arith.constant 5.120000e+02 : f32
    %76 = vector.broadcast %cst_30 : f32 to vector<8x1xf32>
    %77 = arith.divf %75, %76 : vector<8x1xf32>
    %78 = vector.broadcast %77 : vector<8x1xf32> to vector<8x512xf32>
    %79 = arith.subf %71, %78 : vector<8x512xf32>
    %80 = arith.mulf %79, %79 : vector<8x512xf32>
    %cst_31 = arith.constant dense<0.000000e+00> : vector<8xf32>
    %81 = vector.multi_reduction <add>, %80, %cst_31 [1] : vector<8x512xf32> to vector<8xf32>
    %82 = vector.shape_cast %81 : vector<8xf32> to vector<8x1xf32>
    %cst_32 = arith.constant 5.120000e+02 : f32
    %83 = vector.broadcast %cst_32 : f32 to vector<8x1xf32>
    %84 = arith.divf %82, %83 : vector<8x1xf32>
    %85 = vector.broadcast %77 : vector<8x1xf32> to vector<8x512xf32>
    %86 = arith.subf %71, %85 : vector<8x512xf32>
    %cst_33 = arith.constant 9.99999974E-6 : f32
    %87 = vector.broadcast %cst_33 : f32 to vector<8x1xf32>
    %88 = arith.addf %84, %87 : vector<8x1xf32>
    %89 = math.rsqrt %88 : vector<8x1xf32>
    %90 = vector.broadcast %89 : vector<8x1xf32> to vector<8x512xf32>
    %91 = arith.mulf %86, %90 : vector<8x512xf32>
    %92 = vector.broadcast %72 : vector<8x1xf32> to vector<8x512xf32>
    %93 = arith.mulf %91, %92 : vector<8x512xf32>
    %94 = vector.broadcast %73 : vector<8x1xf32> to vector<8x512xf32>
    %95 = arith.addf %93, %94 : vector<8x512xf32>
    %cst_34 = arith.constant 0.000000e+00 : f32
    %96 = vector.broadcast %cst_34 : f32 to vector<8x512xf32>
    %97 = arith.maximumf %95, %96 : vector<8x512xf32>
    %c0_35 = arith.constant 0 : index
    %c0_36 = arith.constant 0 : index
    %98 = vector.load %arg7[%c0_35, %c0_36] : memref<16x8xf32, #tpu.memory_space<vmem>>, vector<16x8xf32>
    %cst_37 = arith.constant dense<0.000000e+00> : vector<16x512xf32>
    %99 = tpu.matmul %98, %97, %cst_37 {dimension_numbers = #tpu.dot_dimension_numbers<[1], [0], [0], [1], [0, 0, 1, 1], [], []>} : vector<16x8xf32>, vector<8x512xf32>, vector<16x512xf32> -> vector<16x512xf32>
    %c0_38 = arith.constant 0 : index
    %c0_39 = arith.constant 0 : index
    %100 = vector.load %arg8[%c0_38, %c0_39] : memref<16x1xf32, #tpu.memory_space<vmem>>, vector<16x1xf32>
    %c0_40 = arith.constant 0 : index
    %c0_41 = arith.constant 0 : index
    %101 = vector.load %arg9[%c0_40, %c0_41] : memref<16x1xf32, #tpu.memory_space<vmem>>, vector<16x1xf32>
    %cst_42 = arith.constant dense<0.000000e+00> : vector<16xf32>
    %102 = vector.multi_reduction <add>, %99, %cst_42 [1] : vector<16x512xf32> to vector<16xf32>
    %103 = vector.shape_cast %102 : vector<16xf32> to vector<16x1xf32>
    %cst_43 = arith.constant 5.120000e+02 : f32
    %104 = vector.broadcast %cst_43 : f32 to vector<16x1xf32>
    %105 = arith.divf %103, %104 : vector<16x1xf32>
    %106 = vector.broadcast %105 : vector<16x1xf32> to vector<16x512xf32>
    %107 = arith.subf %99, %106 : vector<16x512xf32>
    %108 = arith.mulf %107, %107 : vector<16x512xf32>
    %cst_44 = arith.constant dense<0.000000e+00> : vector<16xf32>
    %109 = vector.multi_reduction <add>, %108, %cst_44 [1] : vector<16x512xf32> to vector<16xf32>
    %110 = vector.shape_cast %109 : vector<16xf32> to vector<16x1xf32>
    %cst_45 = arith.constant 5.120000e+02 : f32
    %111 = vector.broadcast %cst_45 : f32 to vector<16x1xf32>
    %112 = arith.divf %110, %111 : vector<16x1xf32>
    %113 = vector.broadcast %105 : vector<16x1xf32> to vector<16x512xf32>
    %114 = arith.subf %99, %113 : vector<16x512xf32>
    %cst_46 = arith.constant 9.99999974E-6 : f32
    %115 = vector.broadcast %cst_46 : f32 to vector<16x1xf32>
    %116 = arith.addf %112, %115 : vector<16x1xf32>
    %117 = math.rsqrt %116 : vector<16x1xf32>
    %118 = vector.broadcast %117 : vector<16x1xf32> to vector<16x512xf32>
    %119 = arith.mulf %114, %118 : vector<16x512xf32>
    %120 = vector.broadcast %100 : vector<16x1xf32> to vector<16x512xf32>
    %121 = arith.mulf %119, %120 : vector<16x512xf32>
    %122 = vector.broadcast %101 : vector<16x1xf32> to vector<16x512xf32>
    %123 = arith.addf %121, %122 : vector<16x512xf32>
    %124 = vector.extract_strided_slice %123 {offsets = [0, 0], sizes = [16, 256], strides = [1, 1]} : vector<16x512xf32> to vector<16x256xf32>
    %125 = arith.addf %124, %1 : vector<16x256xf32>
    %cst_47 = arith.constant 0.000000e+00 : f32
    %126 = vector.broadcast %cst_47 : f32 to vector<16x256xf32>
    %127 = arith.maximumf %125, %126 : vector<16x256xf32>
    %c0_48 = arith.constant 0 : index
    %c0_49 = arith.constant 0 : index
    %c0_50 = arith.constant 0 : index
    %128 = vector.load %arg11[%c0_48, %c0_49, %c0_50] : memref<2x16x256xf32, #tpu.memory_space<vmem>>, vector<1x16x256xf32>
    %129 = vector.shape_cast %128 : vector<1x16x256xf32> to vector<16x256xf32>
    %130 = vector.shape_cast %127 : vector<16x256xf32> to vector<1x16x256xf32>
    tpu.vector_store %arg11[%c0_48, %c0_49, %c0_50], %130 {strides = array<i32>} : memref<2x16x256xf32, #tpu.memory_space<vmem>>, vector<1x16x256xf32>,
    %131 = vector.extract_strided_slice %123 {offsets = [0, 256], sizes = [16, 256], strides = [1, 1]} : vector<16x512xf32> to vector<16x256xf32>
    %132 = arith.addf %131, %3 : vector<16x256xf32>
    %cst_51 = arith.constant 0.000000e+00 : f32
    %133 = vector.broadcast %cst_51 : f32 to vector<16x256xf32>
    %134 = arith.maximumf %132, %133 : vector<16x256xf32>
    %c1_52 = arith.constant 1 : index
    %c0_53 = arith.constant 0 : index
    %c0_54 = arith.constant 0 : index
    %135 = vector.load %arg11[%c1_52, %c0_53, %c0_54] : memref<2x16x256xf32, #tpu.memory_space<vmem>>, vector<1x16x256xf32>
    %136 = vector.shape_cast %135 : vector<1x16x256xf32> to vector<16x256xf32>
    %137 = vector.shape_cast %134 : vector<16x256xf32> to vector<1x16x256xf32>
    tpu.vector_store %arg11[%c1_52, %c0_53, %c0_54], %137 {strides = array<i32>} : memref<2x16x256xf32, #tpu.memory_space<vmem>>, vector<1x16x256xf32>,
    return
  }
}

</mosaic_0001>

<bundles_post_ra>
// kernel: tpu_custom_call.1
= control target key start
LH: loop header
LB: loop body
LE: loop exit
PB: predicated region body
PF: predicated region fallthrough
CT: control target
= control target key end

     0   :  { %16 = vsyncpa [#allocation3], 0  ;;  %s1645_s0 = inlined_call_operand.hbm [shape: f32[2,16,256], index: 0, kind: input, shape index: {}, may-alias: {0,11}]   ;;  %s1646_s1 = inlined_call_operand.vmem [shape: f32[8,16], index: 1, kind: input, shape index: {}]   ;;  %s1647_s2 = inlined_call_operand.vmem [shape: f32[8,1], index: 2, kind: input, shape index: {}]   ;;  %s1648_s3 = inlined_call_operand.vmem [shape: f32[8,1], index: 3, kind: input, shape index: {}]   ;;  %s1649_s4 = inlined_call_operand.vmem [shape: f32[8,72], index: 4, kind: input, shape index: {}]   ;;  %s1650_s5 = inlined_call_operand.vmem [shape: f32[8,1], index: 5, kind: input, shape index: {}]   ;;  %s1651_s6 = inlined_call_operand.vmem [shape: f32[8,1], index: 6, kind: input, shape index: {}]   ;;  %s1652_s7 = inlined_call_operand.vmem [shape: f32[16,8], index: 7, kind: input, shape index: {}]   ;;  %s1653_s8 = inlined_call_operand.vmem [shape: f32[16,1], index: 8, kind: input, shape index: {}]   ;;  %s1654_s9 = inlined_call_operand.vmem [shape: f32[16,1], index: 9, kind: input, shape index: {}]   ;;  %s1655_s10 = inlined_call_operand.vmem [shape: f32[9,512], index: 10, kind: input, shape index: {}]   ;;  %s1656_s11 = inlined_call_operand.hbm [shape: f32[2,16,256], index: 11, kind: output, shape index: {}, may-alias: {0,11}]  }
   0x1   :  { %17 = vsyncpa [#allocation4], 0  ;;  %s1163_s17 = smov [#allocation2]   ;;  %s1115_s21 = scalar_lea.hbm %s1645_s0, 1024 }
   0x2   :  { %s23_s18 = sshll.u32 %s1163_s17, 4  ;;  %p1116_p0 = scmp.ne.s32.totalorder %s1645_s0, %s1115_s21  ;;  %s24_s18 = int_to_ptr.vmem [resolvable:$true] %s23_s18 }
   0x3   :  { %p1119_p1 = scmp.lt.u32.totalorder %s1115_s21, %s1645_s0 }
   0x5   :  { %p1121_p2 = pnand %p1119_p1, %p1116_p0 }
   0x7   :  { %1124 = shalt.err (!%p1121_p2)
}
   0x8   :  { %s1125_s26 = scalar_lea.vmem %s24_s18, 1024  ;;  %p1130_p4 = scmp.lt.s32.totalorder %s24_s18, %s24_s18 }
   0x9   :  { %p1126_p3 = scmp.ne.s32.totalorder %s24_s18, %s1125_s26  ;;  %p1131_p5 = scmp.lt.s32.totalorder %s1125_s26, %s1125_s26 }
   0xb   :  { %p1132_p6 = por %p1131_p5, %p1130_p4 }
   0xd   :  { %p1133_p7 = pnand %p1132_p6, %p1126_p3 }
   0xf   :  { %1136 = shalt.err (!%p1133_p7)
}
  0x10   :  { %s1164_s27 = smov 256   ;;  %s1165_s28 = smov 16  }
  0x11   :  { %29 = dma.hbm_to_vmem [thread:$0]  %s1645_s0, 1024, %s24_s18, [#allocation3], %s1164_s27, %s1164_s27, %s1165_s28  }
  0x12   :  { %1159 = dma.done.wait [#allocation3], 1024  }
  0x13   :  { %1160 = vsyncadd [#allocation3], 4294966272  ;;  %v1166_v0 = vmov 0.0   ;;  %v1249_v1 = vld [vmem:[#allocation2 + $0x8] sm:$0xff]  ;;  %v1251_v2 = vld [vmem:[#allocation2 + $0x18] sm:$0xff]  ;;  %vm63_vm0 = vcmask 130048   ;;  %v276_v59 = vlaneseq }
  0x14   :  { %131 = vmatprep.mubr.f32.mxu0 %v1166_v0  ;;  %202 = vmatprep.mubr.f32.mxu1 %v1166_v0  ;;  %v1253_v3 = vld [vmem:[#allocation2] sm:$0xff]  ;;  %v1056_v4 = vpack.c.bf16 %v1251_v2, %v1249_v1  ;;  %v1257_v5 = vld [vmem:[#allocation2 + $0x10] sm:$0xff]  ;;  %v1259_v6 = vld [vmem:[#allocation2 + $0x28] sm:$0xff]  ;;  %v1167_v22 = vmov 0   ;;  %s1170_s16 = smov 127   ;;  %vm551_vm5 = vcmask 588800  }
  0x15   :  { %v1261_v7 = vld [vmem:[#allocation2 + $0x38] sm:$0xff]  ;;  %v1058_v8 = vpack.c.bf16 %v1257_v5, %v1253_v3  ;;  %v1267_v10 = vld [vmem:[#allocation2 + $0x20] sm:$0xff]  ;;  %v1269_v11 = vld [vmem:[#allocation2 + $0x30] sm:$0xff]  ;;  %1105 = vset.pattern.permute.xlu1 %v1167_v22  ;;  %1106 = vset.pattern.permute.xlu0 %v1167_v22  ;;  %v1318_v60 = vand.u32 127, %v276_v59  ;;  %vm749_vm6 = vcmask 64512  }
  0x16   :  { %v1060_v9 = vpack.c.bf16 %v1261_v7, %v1259_v6  ;;  %1057 = vmatprep.subr.bf16.mxu0 %v1056_v4  ;;  %v1062_v12 = vpack.c.bf16 %v1269_v11, %v1267_v10  ;;  %v62_v13 = vld [vmem:[%s1646_s1] sm:$0xff] }
  0x17   :  { %1059 = vmatpush1.bf16.msra.mxu0 %v1058_v8  ;;  %v209_v21 = vld [vmem:[%s1647_s2] sm:$0xff]  ;;  %s1168_s2 = smov 112   ;;  %vm278_vm1 = vcmp.lt.s32.totalorder %v1318_v60, 16  ;;  %vm461_vm2 = vcmp.lt.s32.totalorder %v1318_v60, 112  ;;  %vm344_vm3 = vcmp.lt.s32.totalorder %v1318_v60, 127  ;;  %vm291_vm4 = vcmp.lt.s32.totalorder %v1318_v60, 1 }
  0x18   :  { %1061 = vmatprep.subr.bf16.mxu1 %v1060_v9  ;;  %240 = vperm.xlu1 %1105, %v209_v21   ;;  %v210_v23 = vld [vmem:[%s1648_s3] sm:$0xff]  ;;  %s1169_s3 = smov 1  }
  0x19   :  { %1063 = vmatpush1.bf16.msra.mxu1 %v1062_v12 }
  0x1a   :  { %1044 = vmatmul.mubr.msk.f32.vlgmr.msra.gmra.mrb[0].mxu0 %vm63_vm0, %v62_v13 }
  0x1b   :  { %619 = vmatprep.mubr.f32.mxu0 %v1166_v0 }
  0x1c   :  { %1045 = vmatmul.mubr.msk.f32.vlgmr.msra.gmra.mrb[0].mxu1 %vm63_vm0, %v62_v13  ;;  %249 = vperm.xlu1 %1105, %v210_v23  }
  0x1d   :  { %690 = vmatprep.mubr.f32.mxu1 %v1166_v0 }
  0x97   :  { %v241_v40 = vpop.permute.xlu1 %240 }
  0x9b   :  { %v250_v49 = vpop.permute.xlu1 %249 }
  0xed   :  { %v133_v14 = vpop.f32.mrb[0].mxu0 }
  0xee   :  { %v135_v15 = vpop.f32.mrb[1].mxu0 }
  0xef   :  { %v204_v16 = vpop.f32.mrb[0].mxu1  ;;  %v211_v17 = vadd.f32 %v135_v15, %v133_v14 }
  0xf0   :  { %v206_v18 = vpop.f32.mrb[1].mxu1 }
  0xf1   :  { %v212_v19 = vadd.f32 %v211_v17, %v204_v16 }
  0xf3   :  { %v213_v20 = vadd.f32 %v212_v19, %v206_v18  ;;  %v1345_v19 = vshrl.u32 %v276_v59, 7 }
  0xf5   :  { %214 = vadd.xlane.f32.xlu0 %v213_v20  ;;  %v1363_v23 = vsub.s32 5, %v1345_v19 }
 0x182   :  { %v215_v24 = vpop.xlane.xlu0 %214 }
 0x183   :  { %v217_v25 = vmul.f32 0.001953125, %v215_v24  ;;  %v1366_v24 = vsub.s32 4, %v1345_v19 }
 0x185   :  { %v218_v26 = vsub.f32 %v133_v14, %v217_v25  ;;  %v219_v27 = vsub.f32 %v135_v15, %v217_v25  ;;  %v220_v28 = vsub.f32 %v204_v16, %v217_v25  ;;  %v221_v29 = vsub.f32 %v206_v18, %v217_v25  ;;  %v1371_v25 = vld [vmem:[%s1655_s10 + $0x8] sm:$0xff] }
 0x187   :  { %v222_v30 = vmul.f32 %v218_v26, %v218_v26  ;;  %v223_v31 = vmul.f32 %v219_v27, %v219_v27  ;;  %v224_v32 = vmul.f32 %v220_v28, %v220_v28  ;;  %v225_v34 = vmul.f32 %v221_v29, %v221_v29 }
 0x189   :  { %v226_v33 = vadd.f32 %v223_v31, %v222_v30  ;;  %v440_v30 = vrot.slane %v1371_v25, %v1363_v23  ;;  %v408_v31 = vrot.slane %v1371_v25, %v1366_v24 }
 0x18b   :  { %v227_v35 = vadd.f32 %v226_v33, %v224_v32 }
 0x18d   :  { %v228_v36 = vadd.f32 %v227_v35, %v225_v34 }
 0x18f   :  { %229 = vadd.xlane.f32.xlu0 %v228_v36 }
 0x21c   :  { %v230_v37 = vpop.xlane.xlu0 %229 }
 0x21d   :  { %v231_v38 = vmul.f32 0.001953125, %v230_v37 }
 0x21f   :  { %v232_v39 = vadd.f32 1e-05, %v231_v38 }
 0x221   :  { %1107 = vrsqrt.f32 %v232_v39 }
 0x22b   :  { %v1108_v41 = vpop.eup %1107 }
 0x22c   :  { %v234_v42 = vmul.f32 %v1108_v41, %v218_v26  ;;  %v235_v43 = vmul.f32 %v1108_v41, %v219_v27  ;;  %v237_v44 = vmul.f32 %v1108_v41, %v221_v29  ;;  %v236_v45 = vmul.f32 %v1108_v41, %v220_v28  ;;  %v1387_v29 = vld [vmem:[%s1655_s10] sm:$0xff] }
 0x22d   :  { %v404_v36 = vrot.slane %v1387_v29, %v1366_v24  ;;  %v436_v38 = vrot.slane %v1387_v29, %v1363_v23 }
 0x22e   :  { %v243_v46 = vmul.f32 %v241_v40, %v234_v42  ;;  %v244_v47 = vmul.f32 %v241_v40, %v235_v43  ;;  %v246_v48 = vmul.f32 %v241_v40, %v237_v44  ;;  %v245_v52 = vmul.f32 %v241_v40, %v236_v45 }
 0x230   :  { %v252_v50 = vadd.f32 %v250_v49, %v243_v46  ;;  %v253_v51 = vadd.f32 %v250_v49, %v244_v47  ;;  %v255_v53 = vadd.f32 %v250_v49, %v246_v48  ;;  %v254_v56 = vadd.f32 %v250_v49, %v245_v52 }
 0x231   :  { %v318_v46 = vsub.s32 1, %v1345_v19  ;;  %v298_v47 = vsub.s32 0, %v1345_v19 }
 0x232   :  { %v1284_v54 = vmax.f32 %v252_v50, 0.0  ;;  %v1286_v55 = vmax.f32 %v253_v51, 0.0  ;;  %v1292_v57 = vmax.f32 %v255_v53, 0.0  ;;  %v1297_v58 = vmax.f32 %v254_v56, 0.0  ;;  %v1446_v50 = vld [vmem:[%s1655_s10 + $0x18] sm:$0xff]  ;;  %v1454_v53 = vld [vmem:[%s1655_s10 + $0x10] sm:$0xff] }
 0x233   :  { %v323_v48 = vrot.slane %v1371_v25, %v318_v46  ;;  %v303_v49 = vrot.slane %v1371_v25, %v298_v47  ;;  %v319_v51 = vrot.slane %v1387_v29, %v318_v46  ;;  %v331_v52 = vrot.slane %v1446_v50, %v318_v46 }
 0x234   :  { %270 = vrot.lane.b32.xlu1 %v1286_v55, %s1165_s28  ;;  %268 = vrot.lane.b32.xlu0 %v1284_v54, %s1165_s28  ;;  %v1417_v39 = vmul.f32 %v408_v31, %v1286_v55  ;;  %v1427_v43 = vmul.f32 %v404_v36, %v1284_v54  ;;  %v1457_v56 = vsub.s32 2, %v1345_v19  ;;  %v327_v59 = vrot.slane %v1454_v53, %v318_v46 }
 0x236   :  { %v356_v36 = vrot.slane %v1371_v25, %v1457_v56 }
 0x238   :  { %274 = vrot.lane.b32.xlu1 %v1292_v57, %s1165_s28  ;;  %459 = vrot.lane.b32.xlu0 %v1292_v57, %s1168_s2 }
 0x23c   :  { %272 = vrot.lane.b32.xlu1 %v1297_v58, %s1165_s28  ;;  %371 = vrot.lane.b32.xlu0 %v1286_v55, %s1169_s3 }
 0x240   :  { %453 = vrot.lane.b32.xlu1 %v1284_v54, %s1168_s2  ;;  %375 = vrot.lane.b32.xlu0 %v1292_v57, %s1169_s3 }
 0x244   :  { %455 = vrot.lane.b32.xlu1 %v1286_v55, %s1168_s2  ;;  %373 = vrot.lane.b32.xlu0 %v1297_v58, %s1169_s3 }
 0x248   :  { %457 = vrot.lane.b32.xlu1 %v1297_v58, %s1168_s2  ;;  %425 = vrot.lane.b32.xlu0 %v1297_v58, %s1170_s16 }
 0x24c   :  { %369 = vrot.lane.b32.xlu1 %v1284_v54, %s1169_s3 }
 0x250   :  { %423 = vrot.lane.b32.xlu1 %v1286_v55, %s1170_s16 }
 0x254   :  { %421 = vrot.lane.b32.xlu1 %v1284_v54, %s1170_s16 }
 0x2a6   :  { %v271_v61 = vpop.permute.xlu1 %270  ;;  %v269_v62 = vpop.permute.xlu0 %268 }
 0x2a7   :  { %v1321_v63 = vsel %vm278_vm1, %v269_v62, %v271_v61 }
 0x2a8   :  { %285 = vrot.lane.b32.xlu0 %v1321_v63, %s1169_s3 }
 0x2aa   :  { %v275_v4 = vpop.permute.xlu1 %274  ;;  %v460_v8 = vpop.permute.xlu0 %459 }
 0x2ab   :  { %v1325_v9 = vsel %vm278_vm1, %v275_v4, %v269_v62 }
 0x2ac   :  { %283 = vrot.lane.b32.xlu1 %v1325_v9, %s1169_s3 }
 0x2ae   :  { %v273_v12 = vpop.permute.xlu1 %272  ;;  %v1333_v15 = vpop.permute.xlu0 %371 }
 0x2af   :  { %v1329_v13 = vsel %vm278_vm1, %v273_v12, %v275_v4  ;;  %v1331_v14 = vsel %vm278_vm1, %v271_v61, %v273_v12  ;;  %v1461_v61 = vsub.s32 3, %v1345_v19  ;;  %v299_v4 = vrot.slane %v1387_v29, %v298_v47 }
 0x2b0   :  { %289 = vrot.lane.b32.xlu1 %v1329_v13, %s1169_s3  ;;  %287 = vrot.lane.b32.xlu0 %v1331_v14, %s1169_s3  ;;  %v334_v46 = vmul.f32 %v327_v59, %v1331_v14  ;;  %v352_v59 = vrot.slane %v1387_v29, %v1457_v56 }
 0x2b2   :  { %v454_v16 = vpop.permute.xlu1 %453  ;;  %v1343_v17 = vpop.permute.xlu0 %375 }
 0x2b3   :  { %v1404_v35 = vsel %vm461_vm2, %v460_v8, %v454_v16 }
 0x2b4   :  { %338 = vrot.lane.b32.xlu1 %v1321_v63, %s1170_s16  ;;  %340 = vrot.lane.b32.xlu0 %v1331_v14, %s1170_s16  ;;  %v384_v14 = vrot.slane %v1387_v29, %v1461_v61 }
 0x2b6   :  { %v456_v18 = vpop.permute.xlu1 %455  ;;  %v1356_v22 = vpop.permute.xlu0 %373 }
 0x2b7   :  { %v1377_v27 = vsel %vm461_vm2, %v454_v16, %v456_v18  ;;  %v307_v16 = vrot.slane %v1454_v53, %v298_v47 }
 0x2b8   :  { %336 = vrot.lane.b32.xlu1 %v1325_v9, %s1170_s16  ;;  %427 = vrot.lane.b32.xlu0 %v1292_v57, %s1170_s16 }
 0x2ba   :  { %v458_v20 = vpop.permute.xlu1 %457  ;;  %v1397_v32 = vpop.permute.xlu0 %425 }
 0x2bb   :  { %v1354_v21 = vsel %vm461_vm2, %v456_v18, %v458_v20  ;;  %v1381_v28 = vsel %vm461_vm2, %v458_v20, %v460_v8  ;;  %v333_v8 = vmul.f32 %v323_v48, %v1321_v63  ;;  %v311_v18 = vrot.slane %v1446_v50, %v298_v47 }
 0x2bc   :  { %342 = vrot.lane.b32.xlu1 %v1329_v13, %s1170_s16  ;;  %468 = vrot.lane.b32.xlu0 %v1354_v21, %s1169_s3  ;;  %v332_v20 = vmul.f32 %v319_v51, %v1325_v9  ;;  %v412_v51 = vrot.slane %v1454_v53, %v1366_v24 }
 0x2be   :  { %v1373_v26 = vpop.permute.xlu1 %369 }
 0x2c0   :  { %466 = vrot.lane.b32.xlu1 %v1377_v27, %s1169_s3  ;;  %470 = vrot.lane.b32.xlu0 %v1381_v28, %s1169_s3 }
 0x2c2   :  { %v424_v33 = vpop.permute.xlu1 %423 }
 0x2c3   :  { %v430_v34 = vsel %vm344_vm3, %v424_v33, %v1397_v32 }
 0x2c4   :  { %v1408_v37 = vmul.f32 %v440_v30, %v430_v34  ;;  %472 = vrot.lane.b32.xlu1 %v1404_v35, %s1169_s3  ;;  %522 = vrot.lane.b32.xlu0 %v1381_v28, %s1170_s16  ;;  %v388_v30 = vrot.slane %v1371_v25, %v1461_v61 }
 0x2c6   :  { %v1419_v40 = vpop.permute.xlu1 %421  ;;  %v1072_v41 = vpack.c.bf16 %v1408_v37, %v1417_v39 }
 0x2c7   :  { %v431_v42 = vsel %vm344_vm3, %v1419_v40, %v424_v33 }
 0x2c8   :  { %v1429_v44 = vmul.f32 %v436_v38, %v431_v42  ;;  %520 = vrot.lane.b32.xlu1 %v1354_v21, %s1170_s16  ;;  %524 = vrot.lane.b32.xlu0 %v1404_v35, %s1170_s16  ;;  %v335_v38 = vmul.f32 %v331_v52, %v1329_v13  ;;  %v379_v13 = vsel %vm291_vm4, %v1373_v26, %v1333_v15 }
 0x2ca   :  { %v1074_v45 = vpack.c.bf16 %v1429_v44, %v1427_v43 }
 0x2cc   :  { %518 = vrot.lane.b32.xlu1 %v1377_v27, %s1170_s16 }
 0x31a   :  { %v286_v54 = vpop.permute.xlu0 %285 }
 0x31e   :  { %v284_v55 = vpop.permute.xlu1 %283 }
 0x31f   :  { %v294_v62 = vsel %vm291_vm4, %v284_v55, %v286_v54 }
 0x320   :  { %v313_v12 = vmul.f32 %v303_v49, %v294_v62 }
 0x322   :  { %v290_v31 = vpop.permute.xlu1 %289  ;;  %v288_v33 = vpop.permute.xlu0 %287  ;;  %v1064_v34 = vpack.c.bf16 %v333_v8, %v313_v12 }
 0x323   :  { %v295_v63 = vsel %vm291_vm4, %v290_v31, %v284_v55  ;;  %v292_v42 = vsel %vm291_vm4, %v288_v33, %v290_v31  ;;  %v293_v9 = vsel %vm291_vm4, %v286_v54, %v288_v33  ;;  %v1499_v31 = vsub.s32 7, %v1345_v19 }
 0x324   :  { %v312_v47 = vmul.f32 %v299_v4, %v295_v63  ;;  %v314_v48 = vmul.f32 %v307_v16, %v293_v9  ;;  %v315_v49 = vmul.f32 %v311_v18, %v292_v42  ;;  %1065 = vmatprep.subr.bf16.mxu0 %v1064_v34  ;;  %v398_v4 = vmul.f32 %v388_v30, %v379_v13 }
 0x325   :  { %v444_v18 = vrot.slane %v1454_v53, %v1363_v23  ;;  %v380_v33 = vsel %vm291_vm4, %v1343_v17, %v1373_v26  ;;  %v1506_v30 = vmul.f32 %v412_v51, %v1297_v58  ;;  %v396_v34 = vrot.slane %v1446_v50, %v1461_v61 }
 0x326   :  { %v1066_v52 = vpack.c.bf16 %v332_v20, %v312_v47  ;;  %v1082_v55 = vpack.c.bf16 %v334_v46, %v314_v48  ;;  %v339_v62 = vpop.permute.xlu1 %338  ;;  %v341_v8 = vpop.permute.xlu0 %340  ;;  %v1080_v12 = vpack.c.bf16 %v335_v38, %v315_v49  ;;  %v392_v20 = vrot.slane %v1454_v53, %v1461_v61 }
 0x327   :  { %v346_v54 = vsel %vm344_vm3, %v339_v62, %v341_v8  ;;  %v448_v38 = vrot.slane %v1446_v50, %v1363_v23  ;;  %v480_v9 = vsub.s32 6, %v1345_v19  ;;  %v360_v58 = vrot.slane %v1454_v53, %v1457_v56 }
 0x328   :  { %v366_v16 = vmul.f32 %v356_v36, %v346_v54  ;;  %1067 = vmatpush1.bf16.msra.mxu0 %v1066_v52  ;;  %1081 = vmatprep.subr.bf16.mxu1 %v1080_v12  ;;  %v364_v61 = vrot.slane %v1446_v50, %v1457_v56  ;;  %v378_v23 = vsel %vm291_vm4, %v1333_v15, %v1356_v22 }
 0x329   :  { %1083 = vmatpush1.bf16.msra.mxu1 %v1082_v55  ;;  %v397_v47 = vmul.f32 %v384_v14, %v380_v33  ;;  %v505_v49 = vrot.slane %v1371_v25, %v1499_v31  ;;  %v416_v13 = vrot.slane %v1446_v50, %v1366_v24  ;;  %v509_v15 = vrot.slane %v1454_v53, %v1499_v31 }
 0x32a   :  { %v337_v36 = vpop.permute.xlu1 %336  ;;  %v428_v63 = vpop.permute.xlu0 %427  ;;  %v1068_v42 = vpack.c.bf16 %v398_v4, %v366_v16  ;;  %v489_v14 = vrot.slane %v1454_v53, %v480_v9  ;;  %v501_v16 = vrot.slane %v1387_v29, %v1499_v31 }
 0x32b   :  { %v347_v46 = vsel %vm344_vm3, %v337_v36, %v339_v62  ;;  %v429_v26 = vsel %vm344_vm3, %v1397_v32, %v428_v63  ;;  %v377_v32 = vsel %vm291_vm4, %v1356_v22, %v1343_v17  ;;  %v432_v56 = vsel %vm344_vm3, %v428_v63, %v1419_v40 }
 0x32c   :  { %v365_v19 = vmul.f32 %v352_v59, %v347_v46  ;;  %v451_v48 = vmul.f32 %v444_v18, %v429_v26  ;;  %1069 = vmatprep.subr.bf16.mxu0 %v1068_v42  ;;  %v485_v17 = vrot.slane %v1371_v25, %v480_v9  ;;  %v399_v22 = vmul.f32 %v392_v20, %v378_v23 }
 0x32d   :  { %v400_v24 = vmul.f32 %v396_v34, %v377_v32  ;;  %v452_v54 = vmul.f32 %v448_v38, %v432_v56  ;;  %v513_v25 = vrot.slane %v1446_v50, %v1499_v31  ;;  %v493_v34 = vrot.slane %v1446_v50, %v480_v9 }
 0x32e   :  { %v1070_v51 = vpack.c.bf16 %v397_v47, %v365_v19  ;;  %v1090_v52 = vpack.c.bf16 %v451_v48, %v1506_v30  ;;  %v343_v55 = vpop.permute.xlu1 %342  ;;  %v469_v62 = vpop.permute.xlu0 %468  ;;  %v481_v30 = vrot.slane %v1387_v29, %v480_v9  ;;  %v516_v38 = vmul.f32 %v509_v15, %v1381_v28  ;;  %v1048_v48 = vld [vmem:[%s1655_s10 + $0x30] ss:$0 sm:$0xff] }
 0x32f   :  { %v345_v12 = vsel %vm344_vm3, %v341_v8, %v343_v55  ;;  %v348_v40 = vsel %vm344_vm3, %v343_v55, %v337_v36  ;;  %v420_v8 = vmul.f32 %v416_v13, %v1292_v57  ;;  %v515_v36 = vmul.f32 %v505_v49, %v1354_v21 }
 0x330   :  { %v367_v59 = vmul.f32 %v360_v58, %v345_v12  ;;  %v368_v4 = vmul.f32 %v364_v61, %v348_v40  ;;  %1071 = vmatpush1.bf16.msra.mxu0 %v1070_v51  ;;  %v514_v9 = vmul.f32 %v501_v16, %v1377_v27  ;;  %v517_v46 = vmul.f32 %v513_v25, %v1404_v35  ;;  %v1046_v27 = vld [vmem:[%s1655_s10 + $0x20] ss:$0 sm:$0xff]  ;;  %v1049_v35 = vld [vmem:[%s1655_s10 + $0x38] ss:$0 sm:$0xff] }
 0x331   :  { %1073 = vmatprep.subr.bf16.mxu0 %v1072_v41  ;;  %v1088_v29 = vpack.c.bf16 %v452_v54, %v420_v8 }
 0x332   :  { %v1086_v18 = vpack.c.bf16 %v399_v22, %v367_v59  ;;  %v467_v20 = vpop.permute.xlu1 %466  ;;  %v471_v53 = vpop.permute.xlu0 %470  ;;  %v1084_v33 = vpack.c.bf16 %v400_v24, %v368_v4  ;;  %v698_v24 = vld [vmem:[%s1651_s6] sm:$0xff] }
 0x333   :  { %v476_v31 = vsel %vm291_vm4, %v467_v20, %v469_v62  ;;  %v475_v37 = vsel %vm291_vm4, %v469_v62, %v471_v53 }
 0x334   :  { %v495_v39 = vmul.f32 %v485_v17, %v476_v31  ;;  %v496_v57 = vmul.f32 %v489_v14, %v475_v37  ;;  %1075 = vmatpush1.bf16.msra.mxu0 %v1074_v45  ;;  %1085 = vmatprep.subr.bf16.mxu1 %v1084_v33  ;;  %v1047_v45 = vld [vmem:[%s1655_s10 + $0x28] ss:$0 sm:$0xff] }
 0x335   :  { %1087 = vmatpush1.bf16.msra.mxu1 %v1086_v18 }
 0x336   :  { %v1094_v41 = vpack.c.bf16 %v516_v38, %v496_v57  ;;  %v473_v50 = vpop.permute.xlu1 %472  ;;  %1089 = vmatprep.subr.bf16.mxu1 %v1088_v29  ;;  %v523_v21 = vpop.permute.xlu0 %522  ;;  %v1076_v28 = vpack.c.bf16 %v515_v36, %v495_v39  ;;  %v697_v38 = vld [vmem:[%s1650_s5] sm:$0xff] }
 0x337   :  { %v474_v63 = vsel %vm291_vm4, %v471_v53, %v473_v50  ;;  %v477_v42 = vsel %vm291_vm4, %v473_v50, %v467_v20 }
 0x338   :  { %v494_v43 = vmul.f32 %v481_v30, %v477_v42  ;;  %v497_v44 = vmul.f32 %v493_v34, %v474_v63  ;;  %1077 = vmatprep.subr.bf16.mxu0 %v1076_v28 }
 0x339   :  { %1091 = vmatpush1.bf16.msra.mxu1 %v1090_v52  ;;  %v550_v52 = vld [vmem:[%s1649_s4] sm:$0xff] }
 0x33a   :  { %v1078_v26 = vpack.c.bf16 %v514_v9, %v494_v43  ;;  %v521_v58 = vpop.permute.xlu1 %520  ;;  %v1092_v61 = vpack.c.bf16 %v517_v46, %v497_v44  ;;  %v525_v47 = vpop.permute.xlu0 %524 }
 0x33b   :  { %v527_v23 = vsel %vm344_vm3, %v521_v58, %v523_v21  ;;  %v526_v32 = vsel %vm344_vm3, %v523_v21, %v525_v47 }
 0x33c   :  { %v547_v19 = vmul.f32 %v1047_v45, %v527_v23  ;;  %1079 = vmatpush1.bf16.msra.mxu0 %v1078_v26  ;;  %1093 = vmatprep.subr.bf16.mxu1 %v1092_v61  ;;  %v548_v55 = vmul.f32 %v1048_v48, %v526_v32 }
 0x33d   :  { %1095 = vmatpush1.bf16.msra.mxu1 %v1094_v41 }
 0x33e   :  { %v519_v49 = vpop.permute.xlu1 %518  ;;  %571 = vmatprep.subr.mxu0 %v547_v19 }
 0x33f   :  { %v528_v56 = vsel %vm344_vm3, %v519_v49, %v521_v58  ;;  %v529_v13 = vsel %vm344_vm3, %v525_v47, %v519_v49 }
 0x340   :  { %v546_v15 = vmul.f32 %v1046_v27, %v528_v56  ;;  %v549_v51 = vmul.f32 %v1049_v35, %v529_v13  ;;  %v747_v27 = vld [vmem:[%s1652_s7] sm:$0xff]  ;;  %v748_v35 = vld [vmem:[%s1652_s7 + $0x8] sm:$0xff] }
 0x342   :  { %572 = vmatpush1.msra.mxu0 %v546_v15  ;;  %642 = vmatprep.subr.mxu1 %v549_v51 }
 0x343   :  { %1050 = vmatmul.mubr.msk.f32.vlgmr.msra.gmra.mrb[2].mxu0 %vm551_vm5, %v550_v52  ;;  %643 = vmatpush1.msra.mxu1 %v548_v55 }
 0x344   :  { %1051 = vmatmul.mubr.msk.f32.vlgmr.msra.gmra.mrb[2].mxu1 %vm551_vm5, %v550_v52  ;;  %820 = vmatprep.mubr.f32.mxu0 %v1166_v0 }
 0x345   :  { %897 = vmatprep.mubr.f32.mxu1 %v1166_v0 }
 0x416   :  { %v621_v62 = vpop.f32.mrb[2].mxu0 }
 0x417   :  { %v623_v60 = vpop.f32.mrb[3].mxu0  ;;  %v692_v17 = vpop.f32.mrb[2].mxu1 }
 0x418   :  { %v699_v22 = vadd.f32 %v623_v60, %v621_v62  ;;  %v694_v12 = vpop.f32.mrb[3].mxu1 }
 0x41a   :  { %v700_v40 = vadd.f32 %v699_v22, %v692_v17 }
 0x41c   :  { %v701_v14 = vadd.f32 %v700_v40, %v694_v12  ;;  %v912_v40 = vld [vmem:[%s1654_s9] sm:$0xff] }
 0x41e   :  { %702 = vadd.xlane.f32.xlu1 %v701_v14  ;;  %v911_v14 = vld [vmem:[%s1653_s8 + $0x8] sm:$0xff] }
 0x42f   :  { %736 = vperm.xlu1 %1105, %v698_v24  }
 0x4ab   :  { %v703_v54 = vpop.xlane.xlu1 %702 }
 0x4ac   :  { %v704_v59 = vmul.f32 0.001953125, %v703_v54 }
 0x4ae   :  { %v705_v4 = vsub.f32 %v621_v62, %v704_v59  ;;  %v706_v16 = vsub.f32 %v623_v60, %v704_v59  ;;  %v707_v25 = vsub.f32 %v692_v17, %v704_v59  ;;  %v708_v8 = vsub.f32 %v694_v12, %v704_v59 }
 0x4af   :  { %v737_v43 = vpop.permute.xlu1 %736 }
 0x4b0   :  { %v709_v18 = vmul.f32 %v705_v4, %v705_v4  ;;  %v710_v20 = vmul.f32 %v706_v16, %v706_v16  ;;  %v711_v53 = vmul.f32 %v707_v25, %v707_v25  ;;  %v712_v30 = vmul.f32 %v708_v8, %v708_v8 }
 0x4b2   :  { %v713_v33 = vadd.f32 %v710_v20, %v709_v18 }
 0x4b4   :  { %v714_v34 = vadd.f32 %v713_v33, %v711_v53 }
 0x4b6   :  { %v715_v36 = vadd.f32 %v714_v34, %v712_v30 }
 0x4b8   :  { %716 = vadd.xlane.f32.xlu0 %v715_v36 }
 0x4ce   :  { %727 = vperm.xlu0 %1106, %v697_v38  }
 0x545   :  { %v717_v31 = vpop.xlane.xlu0 %716 }
 0x546   :  { %v718_v37 = vmul.f32 0.001953125, %v717_v31 }
 0x548   :  { %v719_v39 = vadd.f32 1e-05, %v718_v37 }
 0x54a   :  { %1109 = vrsqrt.f32 %v719_v39 }
 0x54d   :  { %v728_v29 = vpop.permute.xlu0 %727 }
 0x554   :  { %v1110_v57 = vpop.eup %1109 }
 0x555   :  { %v721_v41 = vmul.f32 %v1110_v57, %v705_v4  ;;  %v722_v50 = vmul.f32 %v1110_v57, %v706_v16  ;;  %v723_v21 = vmul.f32 %v1110_v57, %v707_v25  ;;  %v724_v28 = vmul.f32 %v1110_v57, %v708_v8 }
 0x557   :  { %v730_v63 = vmul.f32 %v728_v29, %v721_v41  ;;  %v731_v42 = vmul.f32 %v728_v29, %v722_v50  ;;  %v732_v9 = vmul.f32 %v728_v29, %v723_v21  ;;  %v733_v46 = vmul.f32 %v728_v29, %v724_v28 }
 0x559   :  { %v739_v44 = vadd.f32 %v737_v43, %v730_v63  ;;  %v741_v45 = vadd.f32 %v737_v43, %v732_v9  ;;  %v740_v26 = vadd.f32 %v737_v43, %v731_v42  ;;  %v742_v58 = vadd.f32 %v737_v43, %v733_v46  ;;  %v913_v9 = vld [vmem:[%s1654_s9 + $0x8] sm:$0xff]  ;;  %s1171_s9 = smov [#allocation5]  }
 0x55a   :  { %s1032_s24 = sshll.u32 %s1171_s9, 4  ;;  %s1033_s24 = int_to_ptr.vmem [resolvable:$true] %s1032_s24 }
 0x55b   :  { %v744_v61 = vmax.f32 %v740_v26, 0.0  ;;  %v746_v23 = vmax.f32 %v742_v58, 0.0  ;;  %v743_v47 = vmax.f32 %v739_v44, 0.0  ;;  %v745_v19 = vmax.f32 %v741_v45, 0.0  ;;  %s1137_s25 = scalar_lea.vmem %s1033_s24, 1024  ;;  %p1142_p9 = scmp.lt.s32.totalorder %s1033_s24, %s1033_s24 }
 0x55c   :  { %p1138_p8 = scmp.ne.s32.totalorder %s1033_s24, %s1137_s25  ;;  %p1143_p10 = scmp.lt.s32.totalorder %s1137_s25, %s1137_s25 }
 0x55d   :  { %756 = vmatprep.subr.mxu0 %v744_v61  ;;  %833 = vmatprep.subr.mxu1 %v746_v23 }
 0x55e   :  { %757 = vmatpush1.msra.mxu0 %v743_v47  ;;  %834 = vmatpush1.msra.mxu1 %v745_v19  ;;  %p1144_p11 = por %p1143_p10, %p1142_p9 }
 0x55f   :  { %1052 = vmatmul.mubr.msk.f32.vlgmr.msra.gmra.mrb[4].mxu0 %vm749_vm6, %v747_v27  ;;  %1054 = vmatmul.mubr.msk.f32.vlgmr.msra.gmra.mrb[4].mxu1 %vm749_vm6, %v747_v27 }
 0x560   :  { %826 = vmatprep.mubr.f32.mxu0 %v1166_v0  ;;  %903 = vmatprep.mubr.f32.mxu1 %v1166_v0  ;;  %v910_v0 = vld [vmem:[%s1653_s8] sm:$0xff]  ;;  %p1145_p12 = pnand %p1144_p11, %p1138_p8 }
 0x563   :  { %1053 = vmatmul.mubr.msk.f32.gmra.mrb[6].mxu0 %vm749_vm6, %v748_v35  ;;  %1055 = vmatmul.mubr.msk.f32.gmra.mrb[6].mxu1 %vm749_vm6, %v748_v35 }
 0x632   :  { %v822_v48 = vpop.f32.mrb[4].mxu0  ;;  %v899_v32 = vpop.f32.mrb[4].mxu1 }
 0x633   :  { %v824_v49 = vpop.f32.mrb[5].mxu0  ;;  %v901_v56 = vpop.f32.mrb[5].mxu1 }
 0x634   :  { %v914_v13 = vadd.f32 %v824_v49, %v822_v48 }
 0x636   :  { %v915_v15 = vadd.f32 %v914_v13, %v899_v32  ;;  %v828_v51 = vpop.f32.mrb[6].mxu0  ;;  %v905_v52 = vpop.f32.mrb[6].mxu1 }
 0x637   :  { %v830_v55 = vpop.f32.mrb[7].mxu0  ;;  %v907_v62 = vpop.f32.mrb[7].mxu1 }
 0x638   :  { %v919_v60 = vadd.f32 %v830_v55, %v828_v51  ;;  %v916_v17 = vadd.f32 %v915_v15, %v901_v56 }
 0x63a   :  { %v920_v22 = vadd.f32 %v919_v60, %v905_v52  ;;  %917 = vadd.xlane.f32.xlu1 %v916_v17 }
 0x63c   :  { %v921_v12 = vadd.f32 %v920_v22, %v907_v62 }
 0x63e   :  { %922 = vadd.xlane.f32.xlu0 %v921_v12 }
 0x64b   :  { %968 = vperm.xlu1 %1105, %v910_v0  }
 0x64f   :  { %986 = vperm.xlu1 %1105, %v912_v40  }
 0x654   :  { %973 = vperm.xlu0 %1106, %v911_v14  }
 0x6c7   :  { %v918_v24 = vpop.xlane.xlu1 %917 }
 0x6c8   :  { %v924_v54 = vmul.f32 0.001953125, %v918_v24 }
 0x6ca   :  { %v926_v59 = vsub.f32 %v822_v48, %v924_v54  ;;  %v927_v4 = vsub.f32 %v824_v49, %v924_v54  ;;  %v928_v16 = vsub.f32 %v899_v32, %v924_v54  ;;  %v929_v8 = vsub.f32 %v901_v56, %v924_v54 }
 0x6cb   :  { %v923_v25 = vpop.xlane.xlu0 %922  ;;  %v969_v46 = vpop.permute.xlu1 %968 }
 0x6cc   :  { %v925_v18 = vmul.f32 0.001953125, %v923_v25  ;;  %v934_v20 = vmul.f32 %v926_v59, %v926_v59  ;;  %v935_v53 = vmul.f32 %v927_v4, %v927_v4  ;;  %v936_v33 = vmul.f32 %v928_v16, %v928_v16 }
 0x6cd   :  { %v937_v31 = vmul.f32 %v929_v8, %v929_v8 }
 0x6ce   :  { %v930_v30 = vsub.f32 %v828_v51, %v925_v18  ;;  %v931_v34 = vsub.f32 %v830_v55, %v925_v18  ;;  %v942_v36 = vadd.f32 %v935_v53, %v934_v20  ;;  %v932_v38 = vsub.f32 %v905_v52, %v925_v18 }
 0x6cf   :  { %v933_v39 = vsub.f32 %v907_v62, %v925_v18  ;;  %v987_v43 = vpop.permute.xlu1 %986 }
 0x6d0   :  { %v943_v37 = vadd.f32 %v942_v36, %v936_v33  ;;  %v938_v57 = vmul.f32 %v930_v30, %v930_v30  ;;  %v939_v29 = vmul.f32 %v931_v34, %v931_v34  ;;  %v940_v50 = vmul.f32 %v932_v38, %v932_v38 }
 0x6d1   :  { %v941_v28 = vmul.f32 %v933_v39, %v933_v39 }
 0x6d2   :  { %v944_v41 = vadd.f32 %v943_v37, %v937_v31  ;;  %v947_v21 = vadd.f32 %v939_v29, %v938_v57 }
 0x6d3   :  { %v974_v60 = vpop.permute.xlu0 %973 }
 0x6d4   :  { %945 = vadd.xlane.f32.xlu1 %v944_v41  ;;  %v948_v63 = vadd.f32 %v947_v21, %v940_v50 }
 0x6d6   :  { %v949_v42 = vadd.f32 %v948_v63, %v941_v28 }
 0x6d8   :  { %950 = vadd.xlane.f32.xlu1 %v949_v42 }
 0x6e9   :  { %991 = vperm.xlu1 %1105, %v913_v9  }
 0x761   :  { %v946_v44 = vpop.xlane.xlu1 %945 }
 0x762   :  { %v952_v45 = vmul.f32 0.001953125, %v946_v44 }
 0x764   :  { %v954_v26 = vadd.f32 1e-05, %v952_v45 }
 0x765   :  { %v951_v58 = vpop.xlane.xlu1 %950 }
 0x766   :  { %1111 = vrsqrt.f32 %v954_v26  ;;  %v953_v61 = vmul.f32 0.001953125, %v951_v58 }
 0x768   :  { %v955_v23 = vadd.f32 1e-05, %v953_v61 }
 0x76a   :  { %1113 = vrsqrt.f32 %v955_v23 }
 0x770   :  { %v1112_v47 = vpop.eup %1111 }
 0x771   :  { %v958_v19 = vmul.f32 %v1112_v47, %v926_v59  ;;  %v959_v27 = vmul.f32 %v1112_v47, %v927_v4  ;;  %v960_v35 = vmul.f32 %v1112_v47, %v928_v16  ;;  %v961_v48 = vmul.f32 %v1112_v47, %v929_v8  ;;  %v992_v59 = vpop.permute.xlu1 %991 }
 0x773   :  { %v976_v32 = vmul.f32 %v969_v46, %v958_v19  ;;  %v977_v49 = vmul.f32 %v969_v46, %v959_v27  ;;  %v978_v56 = vmul.f32 %v969_v46, %v960_v35  ;;  %v979_v13 = vmul.f32 %v969_v46, %v961_v48 }
 0x774   :  { %v1114_v15 = vpop.eup %1113 }
 0x775   :  { %v962_v51 = vmul.f32 %v1114_v15, %v930_v30  ;;  %v963_v52 = vmul.f32 %v1114_v15, %v931_v34  ;;  %v964_v55 = vmul.f32 %v1114_v15, %v932_v38  ;;  %v965_v62 = vmul.f32 %v1114_v15, %v933_v39 }
 0x776   :  { %v994_v17 = vadd.f32 %v987_v43, %v976_v32  ;;  %v995_v22 = vadd.f32 %v987_v43, %v977_v49  ;;  %v996_v12 = vadd.f32 %v987_v43, %v978_v56  ;;  %v997_v0 = vadd.f32 %v987_v43, %v979_v13 }
 0x777   :  { %v980_v40 = vmul.f32 %v974_v60, %v962_v51  ;;  %v981_v14 = vmul.f32 %v974_v60, %v963_v52  ;;  %v982_v24 = vmul.f32 %v974_v60, %v964_v55  ;;  %v983_v54 = vmul.f32 %v974_v60, %v965_v62 }
 0x778   :  { %v1002_v4 = vadd.f32 %v994_v17, %v1253_v3  ;;  %v1003_v16 = vadd.f32 %v995_v22, %v1249_v1  ;;  %v1014_v25 = vadd.f32 %v996_v12, %v1267_v10  ;;  %v1015_v8 = vadd.f32 %v997_v0, %v1259_v6 }
 0x779   :  { %v998_v18 = vadd.f32 %v992_v59, %v980_v40  ;;  %v999_v20 = vadd.f32 %v992_v59, %v981_v14  ;;  %v1000_v53 = vadd.f32 %v992_v59, %v982_v24  ;;  %v1001_v33 = vadd.f32 %v992_v59, %v983_v54 }
 0x77a   :  { %v1006_v30 = vmax.f32 %v1002_v4, 0.0  ;;  %v1007_v34 = vmax.f32 %v1003_v16, 0.0  ;;  %v1018_v36 = vmax.f32 %v1014_v25, 0.0  ;;  %v1019_v38 = vmax.f32 %v1015_v8, 0.0 }
 0x77b   :  { %v1004_v31 = vadd.f32 %v998_v18, %v1257_v5  ;;  %v1005_v3 = vadd.f32 %v999_v20, %v1251_v2  ;;  %v1016_v1 = vadd.f32 %v1000_v53, %v1269_v11  ;;  %v1017_v10 = vadd.f32 %v1001_v33, %v1261_v7 }
 0x77c   :  { %1010 = vst [vmem:[#allocation5] sm:$0xff] %v1006_v30  ;;  %1011 = vst [vmem:[#allocation5 + $0x8] sm:$0xff] %v1007_v34 }
 0x77d   :  { %1023 = vst [vmem:[#allocation5 + $0x20] sm:$0xff] %v1018_v36  ;;  %1024 = vst [vmem:[#allocation5 + $0x28] sm:$0xff] %v1019_v38  ;;  %v1008_v6 = vmax.f32 %v1004_v31, 0.0  ;;  %v1009_v37 = vmax.f32 %v1005_v3, 0.0  ;;  %v1020_v39 = vmax.f32 %v1016_v1, 0.0  ;;  %v1021_v57 = vmax.f32 %v1017_v10, 0.0 }
 0x77f   :  { %1012 = vst [vmem:[#allocation5 + $0x10] sm:$0xff] %v1008_v6  ;;  %1013 = vst [vmem:[#allocation5 + $0x18] sm:$0xff] %v1009_v37 }
 0x780   :  { %1025 = vst [vmem:[#allocation5 + $0x30] sm:$0xff] %v1020_v39  ;;  %1026 = vst [vmem:[#allocation5 + $0x38] sm:$0xff] %v1021_v57 }
 0x781   :  { %1148 = shalt.err (!%p1145_p12)
}
 0x782   :  { %s1149_s30 = scalar_lea.hbm %s1656_s11, 1024 }
 0x783   :  { %p1150_p13 = scmp.ne.s32.totalorder %s1656_s11, %s1149_s30  ;;  %p1153_p0 = scmp.lt.u32.totalorder %s1149_s30, %s1656_s11 }
 0x785   :  { %p1155_p1 = pnand %p1153_p0, %p1150_p13 }
 0x787   :  { %1158 = shalt.err (!%p1155_p1)
}
 0x788   :  { %1038 = dma.vmem_to_hbm [thread:$0]  %s1033_s24, 1024, %s1656_s11, [#allocation4], %s1164_s27, %s1164_s27, %s1165_s28  }
 0x789   :  { %1161 = dma.done.wait [#allocation4], 1024  }
 0x78a   :  { %1162 = vsyncadd [#allocation4], 4294966272 }
 0x78b   :  { %1042 = vsyncpa [#allocation3], 1 }
 0x78c   :  { %1043 = vsyncpa [#allocation4], 1 }

</bundles_post_ra>
